<compile_context>
chip_gen: v7x
topology: tpu7x:2x2x1
jax: 0.10.0
libtpu: 0.0.40
codegen_flags: <defaults>
</compile_context>

<pallas_src>
import jax
import jax.numpy as jnp
from jax.experimental import pallas as pl
from jax.experimental.pallas import tpu as pltpu


def _round_up(x, m):
    return -(-x // m) * m


def _pick_tile(total, target, align):
    """Largest divisor of `total` that is <= target and a multiple of `align`;
    falls back to the full extent (always a legal block shape)."""
    if total <= target:
        return total
    t = (target // align) * align
    while t >= align:
        if total % t == 0:
            return t
        t -= align
    return total


def _vmem_budget_bytes():
    """Usable scoped-VMEM budget derived from physical VMEM. Conservative
    64 MiB fallback keeps the kernel v7x-safe if the query is unavailable."""
    try:
        cap = int(pltpu.get_tpu_info().vmem_capacity_bytes)
    except Exception:
        cap = 64 * 1024 * 1024
    return max(32 * 1024 * 1024, min(cap - 16 * 1024 * 1024, 112 * 1024 * 1024))


def _resident_kernel(th, n_chunks, compute_dtype):
    """Weights fully VMEM-resident; hidden reduction via static chunk loop."""
    def kernel(x_ref, w_fc_ref, w_proj_ref, o_ref, acc_ref):
        # x_ref: (tm, D); w_fc_ref: (D, H); w_proj_ref: (H, D); o_ref: (tm, D)
        x = x_ref[...].astype(compute_dtype)
        acc_ref[...] = jnp.zeros_like(acc_ref)
        for c in range(n_chunks):                  # small static unroll
            lo = c * th
            w_fc = w_fc_ref[:, lo:lo + th].astype(compute_dtype)
            h = jnp.dot(x, w_fc, preferred_element_type=jnp.float32)
            h = jnp.square(jnp.maximum(h, 0.0))    # relu(h)^2 in f32
            w_pj = w_proj_ref[lo:lo + th, :].astype(compute_dtype)
            acc_ref[...] += jnp.dot(h.astype(compute_dtype), w_pj,
                                    preferred_element_type=jnp.float32)
        o_ref[...] = acc_ref[...].astype(o_ref.dtype)
    return kernel


def _streamed_kernel(compute_dtype):
    """Weight blocks streamed over a 2-D grid; H is the innermost reduction."""
    def kernel(x_ref, w_fc_ref, w_proj_ref, o_ref, acc_ref):
        j = pl.program_id(1)

        @pl.when(j == 0)
        def _():
            acc_ref[...] = jnp.zeros_like(acc_ref)

        x = x_ref[...].astype(compute_dtype)
        h = jnp.dot(x, w_fc_ref[...].astype(compute_dtype),
                    preferred_element_type=jnp.float32)
        h = jnp.square(jnp.maximum(h, 0.0))
        acc_ref[...] += jnp.dot(h.astype(compute_dtype),
                                w_proj_ref[...].astype(compute_dtype),
                                preferred_element_type=jnp.float32)

        @pl.when(j == pl.num_programs(1) - 1)
        def _():
            o_ref[...] = acc_ref[...].astype(o_ref.dtype)
    return kernel


def mlp_forward(x, w_fc, w_proj, *, compute_dtype=jnp.bfloat16, out_dtype=None,
                tm_target=512, th_target=1024, path="auto"):
    """x: (B, T, D); w_fc: (D, 4D); w_proj: (4D, D).  Returns (B, T, D)."""
    B, T, D = x.shape
    Din, H = w_fc.shape
    assert Din == D and w_proj.shape == (H, D)
    M = B * T
    out_dtype = jnp.dtype(out_dtype) if out_dtype is not None else jnp.dtype(x.dtype)

    x_item = jnp.dtype(x.dtype).itemsize
    w_item = max(jnp.dtype(w_fc.dtype).itemsize, jnp.dtype(w_proj.dtype).itemsize)
    o_item = out_dtype.itemsize
    c_item = jnp.dtype(compute_dtype).itemsize

    budget = _vmem_budget_bytes()

    # Hidden-axis tile: multiple of 128 lanes dividing H (or the full extent).
    th = _pick_tile(H, th_target, 128)

    # Can both weight matrices live in VMEM?  (2x double-buffer accounting is
    # conservative: the constant index_map means they are only DMA'd once.)
    w_resident_bytes = 2 * 2 * D * H * w_item
    use_resident = (w_resident_bytes <= budget // 2
                    and H % th == 0 and H // th <= 64)
    if path == "resident":
        use_resident = True
    elif path == "streamed":
        use_resident = False

    # Per-row-of-tm VMEM bytes: double-buffered x and out tiles, f32
    # accumulator, and f32 + compute-dtype copies of one (tm, th) hidden chunk.
    per_row = 2 * D * x_item + 2 * D * o_item + 4 * D + th * (4 + c_item)

    def fit_tm(budget_left):
        tm = max(8, min(tm_target, _round_up(M, 8)))
        tm = (tm // 8) * 8
        while tm > 8 and tm * per_row > budget_left:
            tm = max(8, ((tm // 2) // 8) * 8)
        return tm

    if use_resident:
        tm = fit_tm(budget - w_resident_bytes)
    else:
        w_stream_bytes = 2 * 2 * D * th * w_item
        while w_stream_bytes > budget // 2 and th > 128 and (th // 2) % 128 == 0:
            th //= 2
            w_stream_bytes = 2 * 2 * D * th * w_item
        tm = fit_tm(budget - w_stream_bytes)

    # Pad M up to a tile multiple (zero rows give zero outputs, sliced off).
    x2d = x.reshape(M, D)
    M_pad = _round_up(M, tm)
    if M_pad != M:
        x2d = jnp.pad(x2d, ((0, M_pad - M), (0, 0)))
    grid_m = M_pad // tm

    flops = 4 * M_pad * D * H                       # two matmuls, 2*M*N*K each
    w_hbm = (2 * D * H * w_item if use_resident
             else grid_m * 2 * D * H * w_item)      # re-streamed per row tile
    cost = pl.CostEstimate(
        flops=int(flops), transcendentals=0,
        bytes_accessed=int(M_pad * D * x_item + w_hbm + M_pad * D * o_item))

    if use_resident:
        out2d = pl.pallas_call(
            _resident_kernel(th, H // th, compute_dtype),
            out_shape=jax.ShapeDtypeStruct((M_pad, D), out_dtype),
            grid_spec=pltpu.PrefetchScalarGridSpec(
                num_scalar_prefetch=0,
                grid=(grid_m,),
                in_specs=[
                    pl.BlockSpec((tm, D), lambda i: (i, 0)),   # x row tile
                    pl.BlockSpec((D, H), lambda i: (0, 0)),    # W_fc (resident)
                    pl.BlockSpec((H, D), lambda i: (0, 0)),    # W_proj (resident)
                ],
                out_specs=pl.BlockSpec((tm, D), lambda i: (i, 0)),
                scratch_shapes=[pltpu.VMEM((tm, D), jnp.float32)]),
            compiler_params=pltpu.CompilerParams(
                dimension_semantics=("parallel",),
                vmem_limit_bytes=int(budget)),
            cost_estimate=cost,
        )(x2d, w_fc, w_proj)
    else:
        out2d = pl.pallas_call(
            _streamed_kernel(compute_dtype),
            out_shape=jax.ShapeDtypeStruct((M_pad, D), out_dtype),
            grid_spec=pltpu.PrefetchScalarGridSpec(
                num_scalar_prefetch=0,
                grid=(grid_m, H // th),
                in_specs=[
                    pl.BlockSpec((tm, D), lambda i, j: (i, 0)),  # x row tile
                    pl.BlockSpec((D, th), lambda i, j: (0, j)),  # W_fc col block
                    pl.BlockSpec((th, D), lambda i, j: (j, 0)),  # W_proj row block
                ],
                out_specs=pl.BlockSpec((tm, D), lambda i, j: (i, 0)),
                scratch_shapes=[pltpu.VMEM((tm, D), jnp.float32)]),
            compiler_params=pltpu.CompilerParams(
                dimension_semantics=("parallel", "arbitrary"),
                vmem_limit_bytes=int(budget)),
            cost_estimate=cost,
        )(x2d, w_fc, w_proj)

    if M_pad != M:
        out2d = out2d[:M]
    # TODO(synk): for D < 128 a lane-dense output layout (fold rows into lanes)
    # would avoid masked vst.msk stores; negligible at these test sizes.
    return out2d.reshape(B, T, D)


def mlp_reference(x, w_fc, w_proj):
    h = jnp.square(jnp.maximum(x @ w_fc, 0.0))
    return h @ w_proj


if __name__ == "__main__":
    # Small config consistent with the module: n_embd=32 -> hidden=128, B=2, T=8.
    n_embd = 32
    hidden = 4 * n_embd
    B, T = 2, 8

    key = jax.random.PRNGKey(0)
    kx, kfc, kpj = jax.random.split(key, 3)

    x = jax.random.normal(kx, (B, T, n_embd), dtype=jnp.float32)
    w_fc_f32 = jax.random.normal(kfc, (n_embd, hidden), dtype=jnp.float32) * 0.5
    w_proj_f32 = jax.random.normal(kpj, (hidden, n_embd), dtype=jnp.float32) * 0.5

    # "Init-time" persistent bf16 weight storage (cast once, not per call).
    w_fc = w_fc_f32.astype(jnp.bfloat16)
    w_proj = w_proj_f32.astype(jnp.bfloat16)

    # Case 1: module's __init__ state — c_proj zero-initialized => output is 0.
    w_proj0 = jnp.zeros((hidden, n_embd), dtype=jnp.bfloat16)
    out0 = jax.block_until_ready(mlp_forward(x, w_fc, w_proj0))
    assert out0.shape == (B, T, n_embd)
    assert jnp.allclose(out0, 0.0)

    ref = mlp_reference(x, w_fc_f32, w_proj_f32)

    # Case 2: non-trivial c_proj, resident-weight path.
    out_res = jax.block_until_ready(mlp_forward(x, w_fc, w_proj, path="resident"))
    assert out_res.shape == ref.shape
    rel_res = jnp.max(jnp.abs(out_res - ref)) / (jnp.max(jnp.abs(ref)) + 1e-6)
    assert rel_res < 2e-2, f"resident path relative error too large: {rel_res}"

    # Case 3: force the streamed (weight-blocked) fallback path as well.
    out_str = jax.block_until_ready(mlp_forward(x, w_fc, w_proj, path="streamed"))
    rel_str = jnp.max(jnp.abs(out_str - ref)) / (jnp.max(jnp.abs(ref)) + 1e-6)
    assert rel_str < 2e-2, f"streamed path relative error too large: {rel_str}"

    print("KERNEL_OK")
</pallas_src>

<mosaic_0001>
module attributes {stable_mosaic.version = 11 : i64} {
  func.func @kernel(%arg0: i32, %arg1: memref<16x32xf32, #tpu.memory_space<vmem>>, %arg2: memref<32x128xbf16, #tpu.memory_space<vmem>>, %arg3: memref<128x32xbf16, #tpu.memory_space<vmem>>, %arg4: memref<16x32xf32, #tpu.memory_space<vmem>>, %arg5: memref<16x32xf32, #tpu.memory_space<vmem>>) attributes {dimension_semantics = [#tpu.dimension_semantics<parallel>], iteration_bounds = array<i64: 1>, scalar_prefetch = 0 : i64, scratch_operands = 1 : i64, tpu.core_type = #tpu.core_type<tc>, window_params = [{transform_indices = @transform_0, window_bounds = array<i64: 16, 32>}, {pipeline_mode = #tpu.pipeline_mode<synchronous>, transform_indices = @transform_1, window_bounds = array<i64: 32, 128>}, {pipeline_mode = #tpu.pipeline_mode<synchronous>, transform_indices = @transform_2, window_bounds = array<i64: 128, 32>}, {transform_indices = @transform_3, window_bounds = array<i64: 16, 32>}]} {
    %c0 = arith.constant 0 : index
    %c0_0 = arith.constant 0 : index
    %0 = vector.load %arg1[%c0, %c0_0] : memref<16x32xf32, #tpu.memory_space<vmem>>, vector<16x32xf32>
    %1 = arith.truncf %0 : vector<16x32xf32> to vector<16x32xbf16>
    %cst = arith.constant 0.000000e+00 : f32
    %2 = vector.broadcast %cst : f32 to vector<16x32xf32>
    %c0_1 = arith.constant 0 : index
    %c0_2 = arith.constant 0 : index
    %3 = vector.load %arg5[%c0_1, %c0_2] : memref<16x32xf32, #tpu.memory_space<vmem>>, vector<16x32xf32>
    tpu.vector_store %arg5[%c0_1, %c0_2], %2 {strides = array<i32>} : memref<16x32xf32, #tpu.memory_space<vmem>>, vector<16x32xf32>,
    %c0_3 = arith.constant 0 : index
    %c0_4 = arith.constant 0 : index
    %4 = vector.load %arg2[%c0_3, %c0_4] : memref<32x128xbf16, #tpu.memory_space<vmem>>, vector<32x128xbf16>
    %cst_5 = arith.constant dense<0.000000e+00> : vector<16x128xf32>
    %5 = tpu.matmul %1, %4, %cst_5 {dimension_numbers = #tpu.dot_dimension_numbers<[1], [0], [0], [1], [0, 0, 1, 1], [], []>} : vector<16x32xbf16>, vector<32x128xbf16>, vector<16x128xf32> -> vector<16x128xf32>
    %cst_6 = arith.constant 0.000000e+00 : f32
    %6 = vector.broadcast %cst_6 : f32 to vector<16x128xf32>
    %7 = arith.maximumf %5, %6 : vector<16x128xf32>
    %8 = arith.mulf %7, %7 : vector<16x128xf32>
    %c0_7 = arith.constant 0 : index
    %c0_8 = arith.constant 0 : index
    %9 = vector.load %arg3[%c0_7, %c0_8] : memref<128x32xbf16, #tpu.memory_space<vmem>>, vector<128x32xbf16>
    %c0_9 = arith.constant 0 : index
    %c0_10 = arith.constant 0 : index
    %10 = vector.load %arg5[%c0_9, %c0_10] : memref<16x32xf32, #tpu.memory_space<vmem>>, vector<16x32xf32>
    %11 = arith.truncf %8 : vector<16x128xf32> to vector<16x128xbf16>
    %cst_11 = arith.constant dense<0.000000e+00> : vector<16x32xf32>
    %12 = tpu.matmul %11, %9, %cst_11 {dimension_numbers = #tpu.dot_dimension_numbers<[1], [0], [0], [1], [0, 0, 1, 1], [], []>} : vector<16x128xbf16>, vector<128x32xbf16>, vector<16x32xf32> -> vector<16x32xf32>
    %13 = arith.addf %10, %12 : vector<16x32xf32>
    %c0_12 = arith.constant 0 : index
    %c0_13 = arith.constant 0 : index
    %14 = vector.load %arg5[%c0_12, %c0_13] : memref<16x32xf32, #tpu.memory_space<vmem>>, vector<16x32xf32>
    tpu.vector_store %arg5[%c0_12, %c0_13], %13 {strides = array<i32>} : memref<16x32xf32, #tpu.memory_space<vmem>>, vector<16x32xf32>,
    %c0_14 = arith.constant 0 : index
    %c0_15 = arith.constant 0 : index
    %15 = vector.load %arg5[%c0_14, %c0_15] : memref<16x32xf32, #tpu.memory_space<vmem>>, vector<16x32xf32>
    %c0_16 = arith.constant 0 : index
    %c0_17 = arith.constant 0 : index
    %16 = vector.load %arg4[%c0_16, %c0_17] : memref<16x32xf32, #tpu.memory_space<vmem>>, vector<16x32xf32>
    tpu.vector_store %arg4[%c0_16, %c0_17], %15 {strides = array<i32>} : memref<16x32xf32, #tpu.memory_space<vmem>>, vector<16x32xf32>,
    return
  }
  func.func @transform_0(%arg0: i32) -> (i32, i32) {
    %c0_i32 = arith.constant 0 : i32
    %c0_i32_0 = arith.constant 0 : i32
    return %arg0, %c0_i32 : i32, i32
  }
  func.func @transform_1(%arg0: i32) -> (i32, i32) {
    %c0_i32 = arith.constant 0 : i32
    %c0_i32_0 = arith.constant 0 : i32
    %c0_i32_1 = arith.constant 0 : i32
    return %c0_i32, %c0_i32_0 : i32, i32
  }
  func.func @transform_2(%arg0: i32) -> (i32, i32) {
    %c0_i32 = arith.constant 0 : i32
    %c0_i32_0 = arith.constant 0 : i32
    %c0_i32_1 = arith.constant 0 : i32
    return %c0_i32, %c0_i32_0 : i32, i32
  }
  func.func @transform_3(%arg0: i32) -> (i32, i32) {
    %c0_i32 = arith.constant 0 : i32
    %c0_i32_0 = arith.constant 0 : i32
    return %arg0, %c0_i32 : i32, i32
  }
}

</mosaic_0001>

<bundles_post_ra>
// kernel: tpu_custom_call.1
= control target key start
LH: loop header
LB: loop body
LE: loop exit
PB: predicated region body
PF: predicated region fallthrough
CT: control target
= control target key end

     0   :  { %v308_v1 = vmov 0.0   ;;  %vm309_vm0 = vmmov 0   ;;  %vm19_vm1 = vcmask 261120   ;;  %s388_s0 = inlined_call_operand.vmem [shape: f32[16,32], index: 0, kind: input, shape index: {}]   ;;  %s389_s1 = inlined_call_operand.vmem [shape: bf16[32,128], index: 1, kind: input, shape index: {}]   ;;  %s390_s2 = inlined_call_operand.vmem [shape: bf16[128,32], index: 2, kind: input, shape index: {}]   ;;  %s391_s3 = inlined_call_operand.hbm [shape: f32[16,32], index: 3, kind: output, shape index: {}]  }
   0x1   :  { %v274_v0 = vld [vmem:[%s389_s1] sm:$0xff]   ;;  %241 = vmatprep.subr.bf16.mxu0 %v308_v1  ;;  %v275_v2 = vld [vmem:[%s389_s1 + $0x8] sm:$0xff]   ;;  %249 = vmatprep.subr.bf16.mxu1 %v308_v1  ;;  %20 = vst.msk [vmem:[#allocation2] sm:$0xff] %vm19_vm1, %v308_v1  ;;  %21 = vst.msk [vmem:[#allocation2 + $0x8] sm:$0xff] %vm19_vm1, %v308_v1 }
   0x2   :  { %242 = vmatpush3.bf16.msra.mxu0 %v274_v0  ;;  %245 = vmatprep.mubr.msk.bf16.mxu0 %vm309_vm0, %v308_v1  ;;  %v16_v3 = vld [vmem:[%s388_s0] sm:$0xff]  ;;  %v17_v4 = vld [vmem:[%s388_s0 + $0x8] sm:$0xff]  ;;  %v278_v8 = vld [vmem:[%s390_s2 + $0x10] sm:$0xff]  }
   0x3   :  { %243 = vmatprep.subr.bf16.mxu0 %v308_v1  ;;  %v276_v5 = vld [vmem:[%s390_s2] sm:$0xff]   ;;  %265 = vmatprep.mubr.msk.bf16.mxu1 %vm309_vm0, %v308_v1  ;;  %v18_v6 = vpack.c.bf16 %v17_v4, %v16_v3  ;;  %v277_v7 = vld [vmem:[%s390_s2 + $0x8] sm:$0xff]  }
   0x4   :  { %250 = vmatpush3.bf16.msra.mxu1 %v276_v5 }
   0x5   :  { %251 = vmatprep.subr.bf16.mxu1 %v308_v1 }
   0x6   :  { %244 = vmatpush3.bf16.msra.mxu0 %v275_v2 }
   0x8   :  { %252 = vmatpush3.bf16.msra.mxu1 %v277_v7 }
   0x9   :  { %246 = vmatmul.mubr.msk.bf16.vlgmr.msra.gmra.mrb[0].mxu0 %vm19_vm1, %v18_v6  ;;  %253 = vmatprep.subr.bf16.mxu1 %v308_v1 }
   0xa   :  { %8 = vsyncpa [#allocation4], 0  ;;  %v279_v9 = vld [vmem:[%s390_s2 + $0x18] sm:$0xff]   ;;  %v280_v10 = vld [vmem:[%s390_s2 + $0x20] sm:$0xff]  }
   0xb   :  { %v281_v11 = vld [vmem:[%s390_s2 + $0x28] sm:$0xff]   ;;  %v282_v12 = vld [vmem:[%s390_s2 + $0x30] sm:$0xff]   ;;  %v283_v13 = vld [vmem:[%s390_s2 + $0x38] sm:$0xff]   ;;  %s310_s2 = smov [#allocation3]  }
   0xc   :  { %254 = vmatpush3.bf16.msra.mxu1 %v278_v8  ;;  %v102_v23 = vld [vmem:[#allocation2] sm:$0xff]  ;;  %v103_v25 = vld [vmem:[#allocation2 + $0x8] sm:$0xff]  ;;  %s207_s7 = sshll.u32 %s310_s2, 4  ;;  %s208_s7 = int_to_ptr.vmem [resolvable:$true] %s207_s7 }
   0xd   :  { %255 = vmatprep.subr.bf16.mxu1 %v308_v1  ;;  %s284_s8 = scalar_lea.vmem %s208_s7, 256  ;;  %p289_p1 = scmp.lt.s32.totalorder %s208_s7, %s208_s7 }
   0xe   :  { %p285_p0 = scmp.ne.s32.totalorder %s208_s7, %s284_s8  ;;  %p290_p2 = scmp.lt.s32.totalorder %s284_s8, %s284_s8 }
  0x10   :  { %256 = vmatpush3.bf16.msra.mxu1 %v279_v9  ;;  %p291_p3 = por %p290_p2, %p289_p1 }
  0x11   :  { %257 = vmatprep.subr.bf16.mxu1 %v308_v1 }
  0x12   :  { %p292_p4 = pnand %p291_p3, %p285_p0 }
  0x14   :  { %258 = vmatpush3.bf16.msra.mxu1 %v280_v10 }
  0x15   :  { %259 = vmatprep.subr.bf16.mxu1 %v308_v1 }
  0x18   :  { %260 = vmatpush3.bf16.msra.mxu1 %v281_v11 }
  0x19   :  { %261 = vmatprep.subr.bf16.mxu1 %v308_v1 }
  0x1c   :  { %262 = vmatpush3.bf16.msra.mxu1 %v282_v12 }
  0x1d   :  { %263 = vmatprep.subr.bf16.mxu1 %v308_v1 }
  0x20   :  { %264 = vmatpush3.bf16.msra.mxu1 %v283_v13 }
  0xdc   :  { %v75_v14 = vpop.f32.mrb[0].mxu0 }
  0xdd   :  { %v82_v15 = vmax.f32 %v75_v14, 0.0  ;;  %v247_v16 = vpop.f32.mrb[1].mxu0 }
  0xde   :  { %v78_v17 = vpop.f32.mrb[2].mxu0 }
  0xdf   :  { %v83_v18 = vmax.f32 %v78_v17, 0.0  ;;  %v248_v19 = vpop.f32.mrb[3].mxu0  ;;  %v84_v20 = vmul.f32 %v82_v15, %v82_v15 }
  0xe1   :  { %v85_v21 = vmul.f32 %v83_v18, %v83_v18 }
  0xe3   :  { %v104_v22 = vpack.c.bf16 %v85_v21, %v84_v20 }
  0xe5   :  { %266 = vmatmul.mubr.bf16.vlgmr.msra.gmra.mrb[0].mxu1 %v104_v22 }
 0x1b8   :  { %v187_v24 = vpop.f32.mrb[0].mxu1 }
 0x1b9   :  { %v194_v26 = vadd.f32 %v187_v24, %v102_v23  ;;  %v267_v27 = vpop.f32.mrb[1].mxu1 }
 0x1ba   :  { %v190_v28 = vpop.f32.mrb[2].mxu1 }
 0x1bb   :  { %196 = vst.msk [vmem:[#allocation2] sm:$0xff] %vm19_vm1, %v194_v26  ;;  %v195_v29 = vadd.f32 %v190_v28, %v103_v25  ;;  %v268_v30 = vpop.f32.mrb[3].mxu1 }
 0x1bd   :  { %197 = vst.msk [vmem:[#allocation2 + $0x8] sm:$0xff] %vm19_vm1, %v195_v29 }
 0x1c2   :  { %v198_v31 = vld [vmem:[#allocation2] sm:$0xff] }
 0x1c3   :  { %200 = vst.msk [vmem:[#allocation3] sm:$0xff] %vm19_vm1, %v198_v31 }
 0x1c4   :  { %v199_v32 = vld [vmem:[#allocation2 + $0x8] sm:$0xff] }
 0x1c5   :  { %201 = vst.msk [vmem:[#allocation3 + $0x8] sm:$0xff] %vm19_vm1, %v199_v32 }
 0x1c6   :  { %295 = shalt.err (!%p292_p4)
}
 0x1c7   :  { %s296_s11 = scalar_lea.hbm %s391_s3, 256 }
 0x1c8   :  { %p297_p5 = scmp.ne.s32.totalorder %s391_s3, %s296_s11  ;;  %p300_p6 = scmp.lt.u32.totalorder %s296_s11, %s391_s3 }
 0x1ca   :  { %p302_p7 = pnand %p300_p6, %p297_p5 }
 0x1cc   :  { %305 = shalt.err (!%p302_p7)
}
 0x1cd   :  { %s311_s16 = smov 128   ;;  %s312_s17 = smov 8  }
 0x1ce   :  { %213 = dma.vmem_to_hbm [thread:$0]  %s208_s7, 256, %s391_s3, [#allocation4], %s311_s16, %s311_s16, %s312_s17  }
 0x1cf   :  { %306 = dma.done.wait [#allocation4], 256  }
 0x1d0   :  { %307 = vsyncadd [#allocation4], 4294967040 }
 0x1d1   :  { %217 = vsyncpa [#allocation4], 1 }

</bundles_post_ra>
